<compile_context>
chip_gen: v6e
topology: v6e:2x2x1
jax: 0.10.0
libtpu: 0.0.40
codegen_flags: <defaults>
</compile_context>

<pallas_src>
import math

import numpy as np
import jax
import jax.numpy as jnp
from jax.experimental import pallas as pl
from jax.experimental.pallas import tpu as pltpu


def _round_up(x, m):
    return ((x + m - 1) // m) * m


def _round_down(x, m):
    return (x // m) * m


def _lin_pos_enc_kernel(coords_ref, w_ref, b_ref, out_ref):
    # coords_ref: (TILE_R, 4k) int32   (k original rows folded per row)
    # w_ref:      (4k, k*d_model) f32  (block-diagonal, resident across grid)
    # b_ref:      (1,  k*d_model) f32  (stride term already folded in, resident)
    # out_ref:    (TILE_R, k*d_model)  (lane-dense when k>1: k*d_model % 128 == 0)
    x = coords_ref[...].astype(jnp.float32)
    out = jnp.dot(
        x, w_ref[...],
        preferred_element_type=jnp.float32,
        precision=jax.lax.Precision.HIGHEST,   # fp32-accurate: coords can be large voxel ids
    ) + b_ref[...]
    out_ref[...] = out.astype(out_ref.dtype)


def _build_folded_params(weight, bias, stride, k):
    # Built on the host with numpy (once per (weights, stride) in a real model — cacheable),
    # so the XLA graph surrounding the pallas_call stays clean.
    w = np.asarray(weight, np.float32)          # (d_model, 4)
    b = np.asarray(bias, np.float32)            # (d_model,)
    d_model = w.shape[0]
    wT = w.T                                    # rows: x, y, z, stride weights
    bias_eff = b + np.float32(stride) * wT[3]   # fold the static stride term into the bias
    w_big = np.zeros((4 * k, k * d_model), np.float32)
    for j in range(k):
        # coords column 4j+0 (batch index) gets a zero weight row; 4j+1..3 -> x,y,z.
        w_big[4 * j + 1:4 * j + 4, j * d_model:(j + 1) * d_model] = wT[0:3]
    b_big = np.tile(bias_eff, k)[None, :]       # (1, k*d_model)
    return jnp.asarray(w_big), jnp.asarray(b_big)


def linear_positional_encoding(coords, weight, bias, stride=1, out_dtype=jnp.float32):
    """coords: (N, 4) int32 (batch, x, y, z); weight: (d_model, 4) f32; bias: (d_model,) f32."""
    N = coords.shape[0]
    d_model = weight.shape[0]
    out_dtype = jnp.dtype(out_dtype)
    sub = 8 if out_dtype.itemsize == 4 else 16            # sublane granularity of the output

    # ---- lane-dense output folding: k original rows -> one row of k*d_model lanes ----
    k = 128 // math.gcd(d_model, 128)                      # smallest k with (k*d_model) % 128 == 0
    if k > 16:
        k = 1                                              # awkward d_model: unfolded fallback
    dm_big = k * d_model

    w_big, b_big = _build_folded_params(weight, bias, stride, k)

    # ---- per-generation VMEM budget ----
    try:
        vmem_phys = pltpu.get_tpu_info().vmem_capacity_bytes
    except Exception:  # pragma: no cover - conservative default (v7x per-TC)
        vmem_phys = 64 * 1024 * 1024
    vmem_limit = min((vmem_phys * 3) // 4, 96 * 1024 * 1024)   # ~48 MiB on v7x, 96 MiB v5e/v6e

    # ---- tile sizing (folded rows per grid step) ----
    out_row_bytes = out_dtype.itemsize * _round_up(dm_big, 128)   # lane-padded VMEM row
    in_row_bytes = 4 * _round_up(4 * k, 128)                      # int32 coords row
    resident = 2 * 4 * (_round_up(4 * k, 8) + 8) * _round_up(dm_big, 128)  # weight + bias (x2 bufs)
    tile_budget = max(int(0.85 * (vmem_limit - resident)), 1 << 20)

    fold_rows = tile_budget // (2 * (out_row_bytes + in_row_bytes))   # double-buffered in + out
    fold_rows = min(fold_rows, (8 << 20) // out_row_bytes)            # ~8 MiB output tile per buffer

    # Pad coords only to a multiple of k*sub (ragged last block is masked by Pallas).
    N_pad = _round_up(max(N, 1), k * sub)
    n_fold = N_pad // k

    # Keep >= 2 tiles when possible so both v7x TensorCores get work; single tile for tiny N.
    fold_rows = min(fold_rows, _round_up(pl.cdiv(n_fold, 2), sub))
    fold_rows = max(sub, _round_down(fold_rows, sub))
    n_tiles = pl.cdiv(n_fold, fold_rows)

    coords_p = coords if N_pad == N else jnp.pad(coords, ((0, N_pad - N), (0, 0)))
    coords_folded = coords_p.reshape(n_fold, 4 * k)        # free row-major reshape

    cost = pl.CostEstimate(
        flops=2 * N * 4 * d_model,
        transcendentals=0,
        bytes_accessed=N * (4 * 4 + out_dtype.itemsize * d_model),
    )

    out_folded = pl.pallas_call(
        _lin_pos_enc_kernel,
        out_shape=jax.ShapeDtypeStruct((n_fold, dm_big), out_dtype),
        grid=(n_tiles,),
        in_specs=[
            pl.BlockSpec((fold_rows, 4 * k), lambda i: (i, 0)),   # streamed coords tiles
            pl.BlockSpec((4 * k, dm_big), lambda i: (0, 0)),      # weight: resident
            pl.BlockSpec((1, dm_big), lambda i: (0, 0)),          # bias:   resident
        ],
        out_specs=pl.BlockSpec((fold_rows, dm_big), lambda i: (i, 0)),
        compiler_params=pltpu.CompilerParams(
            dimension_semantics=("parallel",),                    # shards grid across v7x's 2 TCs
            vmem_limit_bytes=int(vmem_limit),
        ),
        cost_estimate=cost,
    )(coords_folded, w_big, b_big)

    out = out_folded.reshape(N_pad, d_model)
    if N_pad != N:
        # TODO(synk): a consumer that tolerates k*sub-padded rows can take `out` directly
        # and avoid this extra output copy in the ragged-N case.
        out = out[:N]
    return out


def _reference(coords, weight, bias, stride=1):
    strides = jnp.ones_like(coords[:, 0]) * stride
    pos = jnp.stack(
        [coords[:, 1], coords[:, 2], coords[:, 3], strides], axis=1
    ).astype(jnp.float32)
    return jnp.dot(pos, weight.T, precision=jax.lax.Precision.HIGHEST) + bias


if __name__ == "__main__":
    key = jax.random.PRNGKey(0)

    def run_case(case_key, N, d_model, stride):
        k_c, k_w, k_b = jax.random.split(case_key, 3)
        bound = 1.0 / math.sqrt(4.0)
        weight = jax.random.uniform(k_w, (d_model, 4), jnp.float32, -bound, bound)
        bias = jax.random.uniform(k_b, (d_model,), jnp.float32, -bound, bound)
        coords = jax.random.randint(k_c, (N, 4), 0, 256, dtype=jnp.int32)

        out = jax.block_until_ready(
            linear_positional_encoding(coords, weight, bias, stride=stride)
        )
        ref = _reference(coords, weight, bias, stride=stride)
        assert out.shape == (N, d_model)
        err = float(jnp.max(jnp.abs(out - ref)))
        assert jnp.allclose(out, ref, atol=1e-3, rtol=1e-5), f"max abs err {err}"

    k1, k2, k3 = jax.random.split(key, 3)
    # Toy module shape (d_model=32 -> fold factor k=4), single tile.
    run_case(k1, N=16, d_model=32, stride=1)
    # Ragged N, d_model=48 -> k=8; 2 parallel tiles with a masked partial edge.
    run_case(k2, N=1000, d_model=48, stride=2)
    # Odd d_model -> fold factor capped, unfolded (masked-store) fallback path.
    run_case(k3, N=200, d_model=33, stride=3)

    print("KERNEL_OK")
</pallas_src>

<mosaic_0001>
module attributes {stable_mosaic.version = 11 : i64} {
  func.func @_lin_pos_enc_kernel(%arg0: i32, %arg1: memref<8x16xi32, #tpu.memory_space<vmem>>, %arg2: memref<16x128xf32, #tpu.memory_space<vmem>>, %arg3: memref<1x128xf32, #tpu.memory_space<vmem>>, %arg4: memref<8x128xf32, #tpu.memory_space<vmem>>) attributes {dimension_semantics = [#tpu.dimension_semantics<parallel>], iteration_bounds = array<i64: 1>, scalar_prefetch = 0 : i64, scratch_operands = 0 : i64, tpu.core_type = #tpu.core_type<tc>, window_params = [{transform_indices = @transform_0, window_bounds = array<i64: 8, 16>}, {pipeline_mode = #tpu.pipeline_mode<synchronous>, transform_indices = @transform_1, window_bounds = array<i64: 16, 128>}, {pipeline_mode = #tpu.pipeline_mode<synchronous>, transform_indices = @transform_2, window_bounds = array<i64: 1, 128>}, {transform_indices = @transform_3, window_bounds = array<i64: 8, 128>}]} {
    %c0 = arith.constant 0 : index
    %c0_0 = arith.constant 0 : index
    %0 = vector.load %arg1[%c0, %c0_0] : memref<8x16xi32, #tpu.memory_space<vmem>>, vector<8x16xi32>
    %1 = arith.sitofp %0 : vector<8x16xi32> to vector<8x16xf32>
    %c0_1 = arith.constant 0 : index
    %c0_2 = arith.constant 0 : index
    %2 = vector.load %arg2[%c0_1, %c0_2] : memref<16x128xf32, #tpu.memory_space<vmem>>, vector<16x128xf32>
    %cst = arith.constant dense<0.000000e+00> : vector<8x128xf32>
    %3 = tpu.matmul %1, %2, %cst {dimension_numbers = #tpu.dot_dimension_numbers<[1], [0], [0], [1], [0, 0, 1, 1], [], []>, precision = #tpu.contract_precision<fp32>} : vector<8x16xf32>, vector<16x128xf32>, vector<8x128xf32> -> vector<8x128xf32>
    %c0_3 = arith.constant 0 : index
    %c0_4 = arith.constant 0 : index
    %4 = vector.load %arg3[%c0_3, %c0_4] : memref<1x128xf32, #tpu.memory_space<vmem>>, vector<1x128xf32>
    %5 = vector.broadcast %4 : vector<1x128xf32> to vector<8x128xf32>
    %6 = arith.addf %3, %5 : vector<8x128xf32>
    %c0_5 = arith.constant 0 : index
    %c0_6 = arith.constant 0 : index
    %7 = vector.load %arg4[%c0_5, %c0_6] : memref<8x128xf32, #tpu.memory_space<vmem>>, vector<8x128xf32>
    tpu.vector_store %arg4[%c0_5, %c0_6], %6 {strides = array<i32>} : memref<8x128xf32, #tpu.memory_space<vmem>>, vector<8x128xf32>,
    return
  }
  func.func @transform_0(%arg0: i32) -> (i32, i32) {
    %c0_i32 = arith.constant 0 : i32
    %c0_i32_0 = arith.constant 0 : i32
    return %arg0, %c0_i32 : i32, i32
  }
  func.func @transform_1(%arg0: i32) -> (i32, i32) {
    %c0_i32 = arith.constant 0 : i32
    %c0_i32_0 = arith.constant 0 : i32
    %c0_i32_1 = arith.constant 0 : i32
    return %c0_i32, %c0_i32_0 : i32, i32
  }
  func.func @transform_2(%arg0: i32) -> (i32, i32) {
    %c0_i32 = arith.constant 0 : i32
    %c0_i32_0 = arith.constant 0 : i32
    %c0_i32_1 = arith.constant 0 : i32
    return %c0_i32, %c0_i32_0 : i32, i32
  }
  func.func @transform_3(%arg0: i32) -> (i32, i32) {
    %c0_i32 = arith.constant 0 : i32
    %c0_i32_0 = arith.constant 0 : i32
    return %arg0, %c0_i32 : i32, i32
  }
}

</mosaic_0001>

<bundles_post_ra>
// kernel: tpu_custom_call.1
= control target key start
LH: loop header
LB: loop body
LE: loop exit
PB: predicated region body
PF: predicated region fallthrough
CT: control target
= control target key end

     0   :  { %8 = vsyncpa [#allocation3], 0  ;;  %s711_s0 = inlined_call_operand.hbm [shape: s32[8,16], index: 0, kind: input, shape index: {}]   ;;  %s712_s1 = inlined_call_operand.hbm [shape: f32[16,128], index: 1, kind: input, shape index: {}]   ;;  %s713_s2 = inlined_call_operand.vmem [shape: f32[1,128], index: 2, kind: input, shape index: {}]   ;;  %s714_s3 = inlined_call_operand.hbm [shape: f32[8,128], index: 3, kind: output, shape index: {}]  }
   0x1   :  { %9 = vsyncpa [#allocation6], 0 }
   0x2   :  { %10 = vsyncpa [#allocation4], 0  ;;  %s666_s12 = smov [#allocation2]   ;;  %s667_s14 = smov [#allocation5]  }
   0x3   :  { %s17_s13 = sshll.u32 %s666_s12, 4  ;;  %s26_s15 = sshll.u32 %s667_s14, 4  ;;  %s18_s13 = int_to_ptr.vmem [resolvable:$true] %s17_s13  ;;  %s27_s15 = int_to_ptr.vmem [resolvable:$true] %s26_s15 }
   0x4   :  { %s608_s16 = scalar_lea.vmem %s18_s13, 128  ;;  %p613_p1 = scmp.lt.s32.totalorder %s18_s13, %s18_s13 }
   0x5   :  { %p609_p0 = scmp.ne.s32.totalorder %s18_s13, %s608_s16  ;;  %p614_p2 = scmp.lt.s32.totalorder %s608_s16, %s608_s16 }
   0x7   :  { %p615_p3 = por %p614_p2, %p613_p1 }
   0x9   :  { %p616_p4 = pnand %p615_p3, %p609_p0 }
   0xb   :  { %619 = shalt.err (!%p616_p4)
}
   0xc   :  { %20 = dma.hbm_to_vmem [thread:$0]  %s711_s0, 128, %s18_s13, [#allocation3]  }
   0xd   :  { %s628_s19 = scalar_lea.vmem %s27_s15, 256  ;;  %p633_p6 = scmp.lt.s32.totalorder %s27_s15, %s27_s15 }
   0xe   :  { %p629_p5 = scmp.ne.s32.totalorder %s27_s15, %s628_s19  ;;  %p634_p7 = scmp.lt.s32.totalorder %s628_s19, %s628_s19 }
  0x10   :  { %p635_p8 = por %p634_p7, %p633_p6 }
  0x12   :  { %p636_p9 = pnand %p635_p8, %p629_p5 }
  0x14   :  { %639 = shalt.err (!%p636_p9)
}
  0x15   :  { %s668_s20 = smov 128   ;;  %s669_s21 = smov 8  }
  0x16   :  { %32 = dma.hbm_to_vmem [thread:$0]  %s712_s1, 256, %s27_s15, [#allocation6], %s668_s20, %s668_s20, %s669_s21  }
  0x17   :  { %660 = dma.done.wait [#allocation3], 128  }
  0x18   :  { %661 = vsyncadd [#allocation3], 4294967168 }
  0x19   :  { %662 = dma.done.wait [#allocation6], 256  }
  0x1a   :  { %663 = vsyncadd [#allocation6], 4294967040  ;;  %v670_v0 = vmov 0.0   ;;  %vm671_vm0 = vmmov 0   ;;  %v44_v1 = vld [vmem:[#allocation5 + $0x8] sm:$0xff]  ;;  %v43_v2 = vld [vmem:[#allocation5] sm:$0xff] }
  0x1b   :  { %551 = vmatprep.subr.mxu0 %v670_v0  ;;  %558 = vmatprep.subr.mxu1 %v670_v0  ;;  %v41_v3 = vld [vmem:[#allocation2] sm:$0xff]  ;;  %vm52_vm1 = vcmask 130048   ;;  %v85_v4 = vand.u32 4294901760, %v44_v1  ;;  %v88_v5 = vand.u32 4294901760, %v43_v2  ;;  %s672_s24 = smov [#allocation7]  }
  0x1c   :  { %555 = vmatprep.mubr.msk.f32.mxu0 %vm671_vm0, %v670_v0  ;;  %562 = vmatprep.mubr.msk.f32.mxu1 %vm671_vm0, %v670_v0  ;;  %v42_v6 = vcvt.s32.f32 %v41_v3  ;;  %v532_v21 = vld [vmem:[%s713_s2] ss:$0 sm:$0xff]  ;;  %s522_s25 = sshll.u32 %s672_s24, 4  ;;  %s523_s25 = int_to_ptr.vmem [resolvable:$true] %s522_s25 }
  0x1d   :  { %552 = vmatpush3.msra.mxu0 %v85_v4  ;;  %v163_v7 = vsub.f32 %v44_v1, %v85_v4  ;;  %v170_v8 = vsub.f32 %v43_v2, %v88_v5  ;;  %s640_s2 = scalar_lea.vmem %s523_s25, 128  ;;  %p645_p11 = scmp.lt.s32.totalorder %s523_s25, %s523_s25 }
  0x1e   :  { %v54_v9 = vsel %vm52_vm1, %v42_v6, 0  ;;  %553 = vmatprep.subr.mxu0 %v670_v0  ;;  %p641_p10 = scmp.ne.s32.totalorder %s523_s25, %s640_s2  ;;  %p646_p12 = scmp.lt.s32.totalorder %s640_s2, %s640_s2 }
  0x1f   :  { %v123_v10 = vand.u32 4294901760, %v54_v9  ;;  %v164_v11 = vand.u32 4294901760, %v163_v7  ;;  %554 = vmatpush3.msra.mxu0 %v88_v5  ;;  %v171_v12 = vand.u32 4294901760, %v170_v8 }
  0x20   :  { %565 = vmatprep.subr.mxu0 %v670_v0  ;;  %p647_p13 = por %p646_p12, %p645_p11 }
  0x21   :  { %v124_v13 = vsub.f32 %v54_v9, %v123_v10  ;;  %v165_v14 = vsub.f32 %v163_v7, %v164_v11  ;;  %v172_v15 = vsub.f32 %v170_v8, %v171_v12 }
  0x22   :  { %p648_p0 = pnand %p647_p13, %p641_p10 }
  0x23   :  { %v125_v16 = vand.u32 4294901760, %v124_v13  ;;  %v166_v17 = vand.u32 4294901760, %v165_v14  ;;  %v173_v18 = vand.u32 4294901760, %v172_v15 }
  0x25   :  { %v126_v19 = vsub.f32 %v124_v13, %v125_v16  ;;  %559 = vmatpush3.msra.mxu1 %v166_v17 }
  0x26   :  { %560 = vmatprep.subr.mxu1 %v670_v0 }
  0x27   :  { %v127_v20 = vand.u32 4294901760, %v126_v19  ;;  %561 = vmatpush3.msra.mxu1 %v173_v18 }
  0x28   :  { %563 = vmatmul.mubr.f32.vlgmr.msra.gmra.mxu1 %v123_v10  ;;  %572 = vmatprep.subr.mxu1 %v670_v0 }
  0x29   :  { %556 = vmatmul.mubr.f32.vlgmr.msra.gmra.mxu0 %v127_v20  ;;  %573 = vmatpush3.msra.mxu1 %v85_v4 }
  0x2a   :  { %566 = vmatpush3.msra.mxu0 %v163_v7  ;;  %574 = vmatprep.subr.mxu1 %v670_v0 }
  0x2b   :  { %567 = vmatprep.subr.mxu0 %v670_v0  ;;  %569 = vmatprep.mubr.msk.f32.mxu0 %vm671_vm0, %v670_v0 }
  0x2c   :  { %568 = vmatpush3.msra.mxu0 %v170_v8  ;;  %575 = vmatpush3.msra.mxu1 %v88_v5 }
  0x2d   :  { %576 = vmatprep.mubr.msk.f32.mxu1 %vm671_vm0, %v670_v0  ;;  %579 = vmatprep.subr.mxu0 %v670_v0 }
  0x2e   :  { %570 = vmatmul.mubr.f32.vlgmr.msra.gmra.mxu0 %v124_v13  ;;  %577 = vmatmul.mubr.f32.vlgmr.msra.gmra.mxu1 %v125_v16 }
  0x2f   :  { %580 = vmatpush3.msra.mxu0 %v164_v11  ;;  %586 = vmatprep.subr.mxu1 %v670_v0 }
  0x30   :  { %581 = vmatprep.subr.mxu0 %v670_v0  ;;  %587 = vmatpush3.msra.mxu1 %v85_v4 }
  0x31   :  { %582 = vmatpush3.msra.mxu0 %v171_v12  ;;  %588 = vmatprep.subr.mxu1 %v670_v0 }
  0x32   :  { %583 = vmatprep.mubr.msk.f32.mxu0 %vm671_vm0, %v670_v0  ;;  %589 = vmatpush3.msra.mxu1 %v88_v5 }
  0x33   :  { %590 = vmatprep.mubr.msk.f32.mxu1 %vm671_vm0, %v670_v0  ;;  %584 = vmatmul.mubr.f32.vlgmr.msra.gmra.mxu0 %v123_v10 }
  0x34   :  { %591 = vmatmul.mubr.f32.vlgmr.msra.gmra.mxu1 %v123_v10 }
  0xe8   :  { %v210_v23 = vpop.f32.mrf.mxu1 }
  0xe9   :  { %v129_v22 = vpop.f32.mrf.mxu0 }
  0xea   :  { %v130_v24 = vadd.f32 %v532_v21, %v129_v22  ;;  %v564_v26 = vpop.f32.mrf.mxu1 }
  0xeb   :  { %v557_v25 = vpop.f32.mrf.mxu0 }
  0xec   :  { %v211_v27 = vadd.f32 %v210_v23, %v130_v24 }
  0xee   :  { %v286_v28 = vpop.f32.mrf.mxu0  ;;  %v361_v29 = vpop.f32.mrf.mxu1 }
  0xef   :  { %v287_v30 = vadd.f32 %v286_v28, %v211_v27 }
  0xf0   :  { %v571_v31 = vpop.f32.mrf.mxu0  ;;  %v578_v32 = vpop.f32.mrf.mxu1 }
  0xf1   :  { %v362_v33 = vadd.f32 %v361_v29, %v287_v30 }
  0xf3   :  { %v438_v34 = vpop.f32.mrf.mxu0 }
  0xf4   :  { %v439_v35 = vadd.f32 %v438_v34, %v362_v33  ;;  %v511_v36 = vpop.f32.mrf.mxu1 }
  0xf5   :  { %v585_v37 = vpop.f32.mrf.mxu0 }
  0xf6   :  { %v512_v38 = vadd.f32 %v511_v36, %v439_v35  ;;  %v592_v39 = vpop.f32.mrf.mxu1 }
  0xf8   :  { %515 = vst [vmem:[#allocation7] sm:$0xff] %v512_v38 }
  0xf9   :  { %651 = shalt.err (!%p648_p0)
}
  0xfa   :  { %525 = dma.vmem_to_hbm [thread:$0]  %s523_s25, 128, %s714_s3, [#allocation4]  }
  0xfb   :  { %664 = dma.done.wait [#allocation4], 128  }
  0xfc   :  { %665 = vsyncadd [#allocation4], 4294967168 }
  0xfd   :  { %529 = vsyncpa [#allocation3], 1 }
  0xfe   :  { %530 = vsyncpa [#allocation6], 1 }
  0xff   :  { %531 = vsyncpa [#allocation4], 1 }

</bundles_post_ra>
